<compile_context>
chip_gen: v7x
topology: tpu7x:2x2x1
jax: 0.10.0
libtpu: 0.0.40
codegen_flags: <defaults>
</compile_context>

<pallas_src>
import functools

import jax
import jax.numpy as jnp
from jax.experimental import pallas as pl
from jax.experimental.pallas import tpu as pltpu


def _round_up(x, m):
    return (x + m - 1) // m * m


def _cdiv(a, b):
    return (a + b - 1) // b


def _vmem_limit(byte_terms):
    est = sum(byte_terms)
    return int(min(48 * 1024 * 1024, max(16 * 1024 * 1024, 2 * est)))


# ---------------------------------------------------------------------------
# Fused kernel, "(A @ H) @ W" order (used when in_dim <= out_dim):
#   acc(tile_n, in_dim) accumulates A_tile @ H_tile over the contraction axis;
#   on the last contraction step, project through W_mean, add bias, ReLU, store.
# ---------------------------------------------------------------------------
def _agg_then_project_kernel(a_ref, h_ref, w_ref, b_ref, o_ref, acc_ref, *,
                             tile_k, h_resident):
    k = pl.program_id(1)

    @pl.when(k == 0)
    def _():
        acc_ref[...] = jnp.zeros_like(acc_ref)

    if h_resident:
        off = pl.multiple_of(k * tile_k, tile_k)
        h_blk = h_ref[pl.ds(off, tile_k), :]       # whole H resident in VMEM
    else:
        h_blk = h_ref[...]                         # streamed per contraction step

    # bf16 x bf16 -> f32 accumulate: native MXU path, no in-kernel upcast.
    acc_ref[...] += jnp.dot(a_ref[...], h_blk, preferred_element_type=jnp.float32)

    @pl.when(k == pl.num_programs(1) - 1)
    def _():
        agg = jnp.dot(acc_ref[...], w_ref[...], preferred_element_type=jnp.float32)
        o_ref[...] = jnp.maximum(agg + b_ref[...], 0.0).astype(o_ref.dtype)


# ---------------------------------------------------------------------------
# "A @ (H @ W)" order (used when out_dim < in_dim): project first, then aggregate.
# ---------------------------------------------------------------------------
def _project_kernel(h_ref, w_ref, p_ref):
    p_ref[...] = jnp.dot(h_ref[...], w_ref[...],
                         preferred_element_type=jnp.float32).astype(p_ref.dtype)


def _aggregate_kernel(a_ref, p_ref, b_ref, o_ref, acc_ref, *, tile_k, p_resident):
    k = pl.program_id(1)

    @pl.when(k == 0)
    def _():
        acc_ref[...] = jnp.zeros_like(acc_ref)

    if p_resident:
        off = pl.multiple_of(k * tile_k, tile_k)
        p_blk = p_ref[pl.ds(off, tile_k), :]
    else:
        p_blk = p_ref[...]

    acc_ref[...] += jnp.dot(a_ref[...], p_blk, preferred_element_type=jnp.float32)

    @pl.when(k == pl.num_programs(1) - 1)
    def _():
        o_ref[...] = jnp.maximum(acc_ref[...] + b_ref[...], 0.0).astype(o_ref.dtype)


def gcn_layer_forward(h, adj, weights, bias, *, tile_n=512, tile_k=512,
                      rhs_resident_budget=8 * 1024 * 1024):
    """Pallas implementation of GCNLayer.forward.

    h:       (N, in_dim)  float32 node features
    adj:     (N, N)       dense 0/1 adjacency (A[i, j] = 1 for edge j -> i)
    weights: (K, in_dim, out_dim)
    bias:    (out_dim,)
    """
    N, in_dim = h.shape
    num_heads, _, out_dim = weights.shape

    # mean over heads is linear: mean_k(h @ W_k) == h @ mean_k(W_k)
    w_mean = jnp.mean(weights.astype(jnp.float32), axis=0)          # (in_dim, out_dim)

    # --- tile sizing: no over-padding for small graphs; keep >= 2 row tiles
    #     when possible so v7x's two TensorCores both get work on the
    #     'parallel' row axis (v5e/v6e unaffected).
    tile_n = max(128, min(tile_n, _round_up(_cdiv(N, 2), 128)))
    tile_k = max(128, min(tile_k, _round_up(N, 128)))

    Nr = _round_up(N, tile_n)            # padded output-row count
    Nc = _round_up(N, tile_k)            # padded contraction (neighbor) count
    out_dim_p = _round_up(out_dim, 128)  # lane-dense (unmasked) output stores

    # bf16 adjacency: exact for 0/1 entries, native MXU operand, half of f32 HBM bytes.
    adj_bf16 = adj.astype(jnp.bfloat16)
    if (Nr, Nc) == (N, N):
        adj_p = adj_bf16
    else:
        adj_p = jnp.zeros((Nr, Nc), jnp.bfloat16).at[:N, :N].set(adj_bf16)

    h_bf16 = h.astype(jnp.bfloat16)
    if Nc == N:
        h_p = h_bf16
    else:
        h_p = jnp.zeros((Nc, in_dim), jnp.bfloat16).at[:N, :].set(h_bf16)

    b_p = jnp.zeros((1, out_dim_p), jnp.float32).at[:, :out_dim].set(
        bias.astype(jnp.float32)[None, :])

    grid = (Nr // tile_n, Nc // tile_k)

    if in_dim <= out_dim:
        # Fused path: contract the N^2 adjacency matmul against the narrower
        # feature dim first, then project + bias + ReLU in the same kernel.
        h_resident = Nc * in_dim * 2 <= rhs_resident_budget
        w_p = jnp.zeros((in_dim, out_dim_p), jnp.float32).at[:, :out_dim].set(w_mean)

        if h_resident:
            h_spec = pl.BlockSpec((Nc, in_dim), lambda i, k: (0, 0))       # resident
            h_bytes = Nc * in_dim * 2
        else:
            h_spec = pl.BlockSpec((tile_k, in_dim), lambda i, k: (k, 0))   # streamed
            h_bytes = 2 * tile_k * in_dim * 2

        vmem = _vmem_limit([
            2 * tile_n * tile_k * 2,            # adjacency double buffer (bf16)
            h_bytes,                            # H (resident or double-buffered)
            2 * in_dim * out_dim_p * 4,         # W_mean
            2 * out_dim_p * 4,                  # bias
            tile_n * max(in_dim, 128) * 4,      # f32 accumulator scratch (lane-padded)
            2 * tile_n * out_dim_p * 4,         # output double buffer
        ])

        kernel = functools.partial(_agg_then_project_kernel,
                                   tile_k=tile_k, h_resident=h_resident)
        out_p = pl.pallas_call(
            kernel,
            out_shape=jax.ShapeDtypeStruct((Nr, out_dim_p), jnp.float32),
            grid_spec=pltpu.PrefetchScalarGridSpec(
                num_scalar_prefetch=0,
                grid=grid,
                in_specs=[
                    pl.BlockSpec((tile_n, tile_k), lambda i, k: (i, k)),     # adjacency tile
                    h_spec,                                                  # H
                    pl.BlockSpec((in_dim, out_dim_p), lambda i, k: (0, 0)),  # W_mean (resident)
                    pl.BlockSpec((1, out_dim_p), lambda i, k: (0, 0)),       # bias (resident)
                ],
                out_specs=pl.BlockSpec((tile_n, out_dim_p), lambda i, k: (i, 0)),
                scratch_shapes=[pltpu.VMEM((tile_n, in_dim), jnp.float32)],
            ),
            compiler_params=pltpu.CompilerParams(
                dimension_semantics=("parallel", "arbitrary"),
                vmem_limit_bytes=vmem),
        )(adj_p, h_p, w_p, b_p)
    else:
        # Project to the narrower out_dim first (bf16 intermediate), then aggregate.
        w_bf16 = jnp.zeros((in_dim, out_dim_p), jnp.bfloat16).at[:, :out_dim].set(
            w_mean.astype(jnp.bfloat16))

        proj_vmem = _vmem_limit([
            2 * tile_k * in_dim * 2,
            2 * in_dim * out_dim_p * 2,
            2 * tile_k * out_dim_p * 2,
        ])
        proj = pl.pallas_call(
            _project_kernel,
            out_shape=jax.ShapeDtypeStruct((Nc, out_dim_p), jnp.bfloat16),
            grid_spec=pltpu.PrefetchScalarGridSpec(
                num_scalar_prefetch=0,
                grid=(Nc // tile_k,),
                in_specs=[
                    pl.BlockSpec((tile_k, in_dim), lambda i: (i, 0)),
                    pl.BlockSpec((in_dim, out_dim_p), lambda i: (0, 0)),
                ],
                out_specs=pl.BlockSpec((tile_k, out_dim_p), lambda i: (i, 0)),
            ),
            compiler_params=pltpu.CompilerParams(
                dimension_semantics=("parallel",),
                vmem_limit_bytes=proj_vmem),
        )(h_p, w_bf16)

        p_resident = Nc * out_dim_p * 2 <= rhs_resident_budget
        if p_resident:
            p_spec = pl.BlockSpec((Nc, out_dim_p), lambda i, k: (0, 0))
            p_bytes = Nc * out_dim_p * 2
        else:
            p_spec = pl.BlockSpec((tile_k, out_dim_p), lambda i, k: (k, 0))
            p_bytes = 2 * tile_k * out_dim_p * 2

        agg_vmem = _vmem_limit([
            2 * tile_n * tile_k * 2,            # adjacency double buffer (bf16)
            p_bytes,                            # proj (resident or double-buffered)
            2 * out_dim_p * 4,                  # bias
            tile_n * out_dim_p * 4,             # f32 accumulator scratch
            2 * tile_n * out_dim_p * 4,         # output double buffer
        ])

        kernel = functools.partial(_aggregate_kernel,
                                   tile_k=tile_k, p_resident=p_resident)
        out_p = pl.pallas_call(
            kernel,
            out_shape=jax.ShapeDtypeStruct((Nr, out_dim_p), jnp.float32),
            grid_spec=pltpu.PrefetchScalarGridSpec(
                num_scalar_prefetch=0,
                grid=grid,
                in_specs=[
                    pl.BlockSpec((tile_n, tile_k), lambda i, k: (i, k)),     # adjacency tile
                    p_spec,                                                  # proj
                    pl.BlockSpec((1, out_dim_p), lambda i, k: (0, 0)),       # bias (resident)
                ],
                out_specs=pl.BlockSpec((tile_n, out_dim_p), lambda i, k: (i, 0)),
                scratch_shapes=[pltpu.VMEM((tile_n, out_dim_p), jnp.float32)],
            ),
            compiler_params=pltpu.CompilerParams(
                dimension_semantics=("parallel", "arbitrary"),
                vmem_limit_bytes=agg_vmem),
        )(adj_p, proj, b_p)

    return out_p[:N, :out_dim]


def gcn_layer_reference(h, adj, weights, bias):
    proj = jnp.einsum("ni,kio->no", h, weights) / weights.shape[0]
    agg = adj @ proj
    return jnp.maximum(agg + bias[None, :], 0.0)


def _make_inputs(key, N, in_dim, out_dim, num_heads):
    k_h, k_w, k_a = jax.random.split(key, 3)
    h = jax.random.normal(k_h, (N, in_dim), dtype=jnp.float32)
    # xavier_uniform_ per head: U(-a, a), a = sqrt(6 / (in_dim + out_dim))
    bound = (6.0 / (in_dim + out_dim)) ** 0.5
    weights = jax.random.uniform(k_w, (num_heads, in_dim, out_dim),
                                 dtype=jnp.float32, minval=-bound, maxval=bound)
    # bias initialized to zeros in the module; tiny perturbation so the bias path is exercised
    bias = jnp.zeros((out_dim,), jnp.float32) + 0.01
    # deterministic synthetic graph: random 0/1 adjacency + self loops
    adj = (jax.random.uniform(k_a, (N, N)) < 0.25).astype(jnp.float32)
    adj = jnp.maximum(adj, jnp.eye(N, dtype=jnp.float32))
    return h, adj, weights, bias


def _check(out, ref, rel=2e-2):
    # bf16 operands on the MXU (f32 accumulate) -> loosened relative tolerance.
    err = float(jnp.max(jnp.abs(out - ref)))
    scale = float(jnp.max(jnp.abs(ref))) + 1e-6
    assert out.shape == ref.shape
    assert err <= rel * scale, (err, scale)


if __name__ == "__main__":
    key = jax.random.PRNGKey(0)
    k1, k2 = jax.random.split(key)

    # case 1: in_dim <= out_dim -> fused (A @ H) @ W_mean path, resident H
    #         (N not tile-aligned -> exercises independent row/col padding)
    h, adj, weights, bias = _make_inputs(k1, N=200, in_dim=8, out_dim=32, num_heads=2)
    out = jax.block_until_ready(gcn_layer_forward(h, adj, weights, bias))
    _check(out, gcn_layer_reference(h, adj, weights, bias))

    # case 1b: same inputs, force the streamed-RHS code path
    out = jax.block_until_ready(
        gcn_layer_forward(h, adj, weights, bias, rhs_resident_budget=0))
    _check(out, gcn_layer_reference(h, adj, weights, bias))

    # case 2: out_dim < in_dim -> project-then-aggregate path (bf16 proj intermediate)
    h, adj, weights, bias = _make_inputs(k2, N=200, in_dim=96, out_dim=16, num_heads=3)
    out = jax.block_until_ready(gcn_layer_forward(h, adj, weights, bias))
    _check(out, gcn_layer_reference(h, adj, weights, bias))

    print("KERNEL_OK")
</pallas_src>

<mosaic_0001>
module attributes {stable_mosaic.version = 11 : i64} {
  func.func @_agg_then_project_kernel(%arg0: i32, %arg1: i32, %arg2: memref<128x256xbf16, #tpu.memory_space<vmem>>, %arg3: memref<256x8xbf16, #tpu.memory_space<vmem>>, %arg4: memref<8x128xf32, #tpu.memory_space<vmem>>, %arg5: memref<1x128xf32, #tpu.memory_space<vmem>>, %arg6: memref<128x128xf32, #tpu.memory_space<vmem>>, %arg7: memref<128x8xf32, #tpu.memory_space<vmem>>) attributes {dimension_semantics = [#tpu.dimension_semantics<parallel>, #tpu.dimension_semantics<arbitrary>], iteration_bounds = array<i64: 2, 1>, scalar_prefetch = 0 : i64, scratch_operands = 1 : i64, tpu.core_type = #tpu.core_type<tc>, window_params = [{transform_indices = @transform_0, window_bounds = array<i64: 128, 256>}, {pipeline_mode = #tpu.pipeline_mode<synchronous>, transform_indices = @transform_1, window_bounds = array<i64: 256, 8>}, {pipeline_mode = #tpu.pipeline_mode<synchronous>, transform_indices = @transform_2, window_bounds = array<i64: 8, 128>}, {pipeline_mode = #tpu.pipeline_mode<synchronous>, transform_indices = @transform_3, window_bounds = array<i64: 1, 128>}, {transform_indices = @transform_4, window_bounds = array<i64: 128, 128>}]} {
    %c0_i32 = arith.constant 0 : i32
    %0 = arith.cmpi eq, %arg1, %c0_i32 : i32
    %1 = arith.extui %0 : i1 to i32
    %c0_i32_0 = arith.constant 0 : i32
    %2 = arith.cmpi ne, %1, %c0_i32_0 : i32
    scf.if %2 {
      %cst_9 = arith.constant 0.000000e+00 : f32
      %15 = vector.broadcast %cst_9 : f32 to vector<128x8xf32>
      %c0_10 = arith.constant 0 : index
      %c0_11 = arith.constant 0 : index
      %16 = vector.load %arg7[%c0_10, %c0_11] : memref<128x8xf32, #tpu.memory_space<vmem>>, vector<128x8xf32>
      tpu.vector_store %arg7[%c0_10, %c0_11], %15 {strides = array<i32>} : memref<128x8xf32, #tpu.memory_space<vmem>>, vector<128x8xf32>,
    } else {
    }
    %c256_i32 = arith.constant 256 : i32
    %3 = arith.muli %arg1, %c256_i32 : i32
    %4 = tpu.assume_multiple %3, 256 : i32
    %5 = arith.index_cast %4 : i32 to index
    %c0 = arith.constant 0 : index
    %6 = vector.load %arg3[%5, %c0] : memref<256x8xbf16, #tpu.memory_space<vmem>>, vector<256x8xbf16>
    %c0_1 = arith.constant 0 : index
    %c0_2 = arith.constant 0 : index
    %7 = vector.load %arg7[%c0_1, %c0_2] : memref<128x8xf32, #tpu.memory_space<vmem>>, vector<128x8xf32>
    %c0_3 = arith.constant 0 : index
    %c0_4 = arith.constant 0 : index
    %8 = vector.load %arg2[%c0_3, %c0_4] : memref<128x256xbf16, #tpu.memory_space<vmem>>, vector<128x256xbf16>
    %cst = arith.constant dense<0.000000e+00> : vector<128x8xf32>
    %9 = tpu.matmul %8, %6, %cst {dimension_numbers = #tpu.dot_dimension_numbers<[1], [0], [0], [1], [0, 0, 1, 1], [], []>} : vector<128x256xbf16>, vector<256x8xbf16>, vector<128x8xf32> -> vector<128x8xf32>
    %10 = arith.addf %7, %9 : vector<128x8xf32>
    %c0_5 = arith.constant 0 : index
    %c0_6 = arith.constant 0 : index
    %11 = vector.load %arg7[%c0_5, %c0_6] : memref<128x8xf32, #tpu.memory_space<vmem>>, vector<128x8xf32>
    tpu.vector_store %arg7[%c0_5, %c0_6], %10 {strides = array<i32>} : memref<128x8xf32, #tpu.memory_space<vmem>>, vector<128x8xf32>,
    %c0_i32_7 = arith.constant 0 : i32
    %12 = arith.cmpi eq, %arg1, %c0_i32_7 : i32
    %13 = arith.extui %12 : i1 to i32
    %c0_i32_8 = arith.constant 0 : i32
    %14 = arith.cmpi ne, %13, %c0_i32_8 : i32
    scf.if %14 {
      %c0_9 = arith.constant 0 : index
      %c0_10 = arith.constant 0 : index
      %15 = vector.load %arg7[%c0_9, %c0_10] : memref<128x8xf32, #tpu.memory_space<vmem>>, vector<128x8xf32>
      %c0_11 = arith.constant 0 : index
      %c0_12 = arith.constant 0 : index
      %16 = vector.load %arg4[%c0_11, %c0_12] : memref<8x128xf32, #tpu.memory_space<vmem>>, vector<8x128xf32>
      %cst_13 = arith.constant dense<0.000000e+00> : vector<128x128xf32>
      %17 = tpu.matmul %15, %16, %cst_13 {dimension_numbers = #tpu.dot_dimension_numbers<[1], [0], [0], [1], [0, 0, 1, 1], [], []>} : vector<128x8xf32>, vector<8x128xf32>, vector<128x128xf32> -> vector<128x128xf32>
      %c0_14 = arith.constant 0 : index
      %c0_15 = arith.constant 0 : index
      %18 = vector.load %arg5[%c0_14, %c0_15] : memref<1x128xf32, #tpu.memory_space<vmem>>, vector<1x128xf32>
      %19 = vector.broadcast %18 : vector<1x128xf32> to vector<128x128xf32>
      %20 = arith.addf %17, %19 : vector<128x128xf32>
      %cst_16 = arith.constant 0.000000e+00 : f32
      %21 = vector.broadcast %cst_16 : f32 to vector<128x128xf32>
      %22 = arith.maximumf %20, %21 : vector<128x128xf32>
      %c0_17 = arith.constant 0 : index
      %c0_18 = arith.constant 0 : index
      %23 = vector.load %arg6[%c0_17, %c0_18] : memref<128x128xf32, #tpu.memory_space<vmem>>, vector<128x128xf32>
      tpu.vector_store %arg6[%c0_17, %c0_18], %22 {strides = array<i32>} : memref<128x128xf32, #tpu.memory_space<vmem>>, vector<128x128xf32>,
    } else {
    }
    return
  }
  func.func @transform_0(%arg0: i32, %arg1: i32) -> (i32, i32) {
    %c0_i32 = arith.constant 0 : i32
    return %arg0, %arg1 : i32, i32
  }
  func.func @transform_1(%arg0: i32, %arg1: i32) -> (i32, i32) {
    %c0_i32 = arith.constant 0 : i32
    %c0_i32_0 = arith.constant 0 : i32
    %c0_i32_1 = arith.constant 0 : i32
    return %c0_i32, %c0_i32_0 : i32, i32
  }
  func.func @transform_2(%arg0: i32, %arg1: i32) -> (i32, i32) {
    %c0_i32 = arith.constant 0 : i32
    %c0_i32_0 = arith.constant 0 : i32
    %c0_i32_1 = arith.constant 0 : i32
    return %c0_i32, %c0_i32_0 : i32, i32
  }
  func.func @transform_3(%arg0: i32, %arg1: i32) -> (i32, i32) {
    %c0_i32 = arith.constant 0 : i32
    %c0_i32_0 = arith.constant 0 : i32
    %c0_i32_1 = arith.constant 0 : i32
    return %c0_i32, %c0_i32_0 : i32, i32
  }
  func.func @transform_4(%arg0: i32, %arg1: i32) -> (i32, i32) {
    %c0_i32 = arith.constant 0 : i32
    %c0_i32_0 = arith.constant 0 : i32
    return %arg0, %c0_i32 : i32, i32
  }
}

</mosaic_0001>

<bundles_post_ra>
// kernel: tpu_custom_call.1
= control target key start
LH: loop header
LB: loop body
LE: loop exit
PB: predicated region body
PF: predicated region fallthrough
CT: control target
= control target key end

     0   :  { %9 = vsyncpa [#allocation4], 0  ;;  %s1765_s0 = inlined_call_operand.hbm [shape: bf16[256,256], index: 0, kind: input, shape index: {}]   ;;  %s1766_s1 = inlined_call_operand.vmem [shape: bf16[256,8], index: 1, kind: input, shape index: {}]   ;;  %s1767_s2 = inlined_call_operand.vmem [shape: f32[8,128], index: 2, kind: input, shape index: {}]   ;;  %s1768_s3 = inlined_call_operand.vmem [shape: f32[1,128], index: 3, kind: input, shape index: {}]   ;;  %s1769_s4 = inlined_call_operand.hbm [shape: f32[256,128], index: 4, kind: output, shape index: {}]  }
   0x1   :  { %11 = vsyncpa [#allocation4 + $0x1], 0 }
   0x2   :  { %12 = vsyncpa [#allocation5], 0 }
   0x3   :  { %14 = vsyncpa [#allocation5 + $0x1], 0  ;;  %s1429_s15 = smov 0   ;;  %s1431_s16 = smov 0  }
   0x4   :  { %s1433_s17 = smov 0   ;;  %s1435_s18 = smov 0  }
   0x5   :  { %s1437_s19 = smov 0   ;;  %s1439_s20 = smov 0  }
   0x6 LB: > { %s985_s21 = sadd.s32 4294967295, %s1395_s20   ;;  %s986_s22 = sadd.s32 4294967294, %s1395_s20   ;;  %s1395_s20 = sphi %s1439_s20, %s20_s20   ;;  %s1391_s19 = sphi %s1437_s19, %s1784_s19   ;;  %s1387_s18 = sphi %s1435_s18, %s1783_s18   ;;  %s1383_s17 = sphi %s1433_s17, %s1782_s17   ;;  %s1379_s16 = sphi %s1431_s16, %s1781_s16   ;;  %s1375_s15 = sphi %s1429_s15, %s1780_s15  }
   0x7   : > { %s32_s23 = sadd.s32 1, %s1391_s19  ;;  %s41_s24 = sadd.s32 1, %s1383_s17 }
   0x8   : > { %p34_p0 = scmp.ge.s32.totalorder %s32_s23, 2  ;;  %p48_p1 = scmp.ne.s32.totalorder %s1383_s17, %s1379_s16 }
   0x9   : > { %p49_p2 = scmp.eq.s32.totalorder %s1395_s20, 0  ;;  %p54_p3 = scmp.ne.s32.totalorder %s1379_s16, %s1375_s15 }
   0xa   : > { %s1786_s23 = smov (%p34_p0, %s32_s23), 0  ;;  %p55_p5 = scmp.eq.s32.totalorder %s985_s21, 0 }
   0xb   : > { %p1470_p4 = por %p49_p2, %p48_p1  ;;  %s36_s26 = ssub.s32 %s1391_s19, %s1786_s23 }
   0xc   : > { %p141_p6 = scmp.eq.s32.totalorder %s985_s21, 1  ;;  %p39_p7 = scmp.eq.s32.totalorder %s36_s26, 0 }
   0xd   : > { %p1476_p8 = por %p55_p5, %p54_p3  ;;  %p147_p10 = scmp.eq.s32.totalorder %s986_s22, 1 }
   0xe   : > { %p1480_p9 = por %p141_p6, %p48_p1  ;;  %p1188_p13 = scmp.lt.s32.totalorder %s1395_s20, 2 }
   0xf   : > { %s1485_s29 = scalar_select %p39_p7, %s1383_s17, %s41_s24  }
  0x10   : > { %s1773_s28 = scalar_select %p1480_p9, 1, 0 }
  0x11   : > { %p1487_p11 = por %p147_p10, %p54_p3  ;;  %s176_s5 = sand.u32 1, %s1383_s17  }
  0x12   : > { %s989_s6 = sshll.u32 %s176_s5, 7  ;;  %s1051_s7 = sshll.u32 %s1391_s19, 11 }
  0x13   : > { %s1774_s30 = scalar_select %p1487_p11, 1, 0 }
  0x14   : > { %s1498_s10 = scalar_lea.hbm %s1765_s0, %s1051_s7  ;;  %s180_s11 = scalar_lea.vmem [#allocation3], %s989_s6 }
  0x15   : > { %s190_s12 = sshll.u32 %s180_s11, 4  ;;  %p1504_p0 = pnand %p1188_p13, %p1470_p4  ;;  %s1500_s12 = int_to_ptr.vmem [resolvable:$true] %s190_s12 }
  0x16   : > { %s1509_s14 = scalar_lea.sflag [#allocation4], %s176_s5  ;;  %s1283_s21 = scalar_lea.hbm %s1498_s10, 2048 }
  0x17   : > { %p1284_p2 = scmp.ne.s32.totalorder %s1498_s10, %s1283_s21  ;;  %p1285_p3 = pneg %p1504_p0 }
  0x18   : > { %s1288_s25 = scalar_lea.hbm %s1765_s0, 4096  ;;  %p1289_p4 = scmp.lt.u32.totalorder %s1498_s10, %s1765_s0 }
  0x19   : > { %p1286_p5 = pnand %p1285_p3, %p1284_p2  ;;  %p1290_p7 = scmp.lt.u32.totalorder %s1288_s25, %s1283_s21 }
  0x1a   : > { %p1292_p13 = scmp.lt.u32.totalorder %s1283_s21, %s1498_s10 }
  0x1b   : > { %p1287_p6 = pneg %p1286_p5  ;;  %p1291_p10 = por %p1290_p7, %p1289_p4 }
  0x1d   : > { %p1293_p12 = por %p1292_p13, %p1291_p10 }
  0x1f   : > { %p1294_p1 = pnand %p1293_p12, %p1287_p6 }
  0x21   : > { %1297 = shalt.err (!%p1294_p1)
}
  0x22   : > { %s1298_s5 = scalar_lea.vmem %s1500_s12, 2048  ;;  %s1397_s7 = smov [#allocation3]  }
  0x23   : > { %p1299_p2 = scmp.ne.s32.totalorder %s1500_s12, %s1298_s5  ;;  %s1303_s8 = sshll.u32 %s1397_s7, 4  ;;  %s1304_s8 = int_to_ptr.vmem [resolvable:$false] %s1303_s8 }
  0x24   : > { %s1305_s9 = scalar_lea.vmem %s1304_s8, 4096  ;;  %p1306_p9 = scmp.lt.s32.totalorder %s1500_s12, %s1304_s8 }
  0x25   : > { %p1301_p5 = pnand %p1299_p2, %p1285_p3  ;;  %p1307_p4 = scmp.lt.s32.totalorder %s1305_s9, %s1298_s5 }
  0x27   : > { %p1302_p11 = pneg %p1301_p5  ;;  %p1308_p7 = por %p1307_p4, %p1306_p9 }
  0x29   : > { %p1309_p10 = pnand %p1308_p7, %p1302_p11 }
  0x2b   : > { %1312 = shalt.err (!%p1309_p10)
}
  0x2c   : > { %s1398_s11 = smov 128   ;;  %s1399_s21 = smov 8  }
  0x2d   : > { %1183 = dma.hbm_to_vmem [thread:$0]  (!%p1504_p0), %s1498_s10, 2048, %s1500_s12, %s1509_s14, %s1398_s11, %s1398_s11, %s1399_s21  }
  0x2e   : > { %p198_p12 = scmp.lt.s32.totalorder %s1395_s20, 3  ;;  %p1776_p1 = scmp.ge.s32.totalorder %s1395_s20, 1 }
  0x30   : > { %p199_p3 = pnand %p1776_p1, %p198_p12 }
  0x31   : > { %s1541_s22 = sand.u32 (!%p199_p3), 1, %s1379_s16  }
  0x32   : > { %202 = sbr.rel (%p199_p3) target bundleno = 598 (0x256), region = 36  ;;  %s994_s24 = sshll.u32 (!%p199_p3), %s1541_s22, 7 }
  0x33   : > { %s205_s25 = scalar_lea.sflag (!%p199_p3), [#allocation4], %s1541_s22  ;;  %s1547_s26 = scalar_lea.vmem (!%p199_p3), [#allocation3], %s994_s24 }
  0x39   : > { %1366 = dma.done.wait (%p1476_p8), %s205_s25, 2048  }
  0x3a   : > { %1368 = vsyncadd (%p1476_p8), %s205_s25, 4294965248  ;;  %v1243_v0 = vld [vmem:[%s1766_s1 + $0x40] sm:$0xff]   ;;  %v1245_v2 = vld [vmem:[%s1766_s1 + $0x48] sm:$0xff]   ;;  %vm241_vm0 = vcmask 64512   ;;  %v1400_v32 = vmov 0.0   ;;  %s1677_s9 = scalar_lea.vmem [#allocation6], %s994_s24 }
  0x3b   : > { %v1244_v1 = vld [vmem:[%s1766_s1] sm:$0xff]   ;;  %1053 = vmatprep.subr.bf16.mxu0 %v1243_v0  ;;  %1160 = vmatprep.subr.bf16.mxu1 %v1243_v0  ;;  %v1246_v3 = vld [vmem:[%s1766_s1 + $0x8] sm:$0xff]   ;;  %v1247_v4 = vld [vmem:[%s1766_s1 + $0x50] sm:$0xff]   ;;  %242 = vst.msk [vmem:[#allocation2] sm:$0xff] %vm241_vm0, %v1400_v32  ;;  %s1052_s24 = sshll.u32 %s1387_s18, 11  ;;  %s899_s11 = sshll.u32 %s1677_s9, 4  ;;  %s1714_s11 = int_to_ptr.vmem [resolvable:$true] %s899_s11 }
  0x3c   : > { %1054 = vmatpush3.bf16.msra.mxu0 %v1244_v1  ;;  %1168 = vmatpush3.bf16.msra.mxu1 %v1244_v1  ;;  %v1248_v5 = vld [vmem:[%s1766_s1 + $0x10] sm:$0xff]   ;;  %v1249_v6 = vld [vmem:[%s1766_s1 + $0x58] sm:$0xff]   ;;  %v1251_v8 = vld [vmem:[%s1766_s1 + $0x60] sm:$0xff]   ;;  %243 = vst.msk [vmem:[#allocation2 + $0x8] sm:$0xff] %vm241_vm0, %v1400_v32  ;;  %s1712_s10 = scalar_lea.hbm %s1769_s4, %s1052_s24  ;;  %s886_s18 = scalar_lea.sflag [#allocation5], %s1541_s22 }
  0x3d   : > { %1055 = vmatprep.subr.bf16.mxu0 %v1245_v2  ;;  %1161 = vmatprep.subr.bf16.mxu1 %v1245_v2  ;;  %v1250_v7 = vld [vmem:[%s1766_s1 + $0x18] sm:$0xff]   ;;  %v1252_v9 = vld [vmem:[%s1766_s1 + $0x20] sm:$0xff]   ;;  %v1253_v10 = vld [vmem:[%s1766_s1 + $0x68] sm:$0xff]   ;;  %244 = vst.msk [vmem:[#allocation2 + $0x10] sm:$0xff] %vm241_vm0, %v1400_v32  ;;  %s1313_s12 = scalar_lea.vmem %s1714_s11, 2048  ;;  %p1777_p9 = scmp.ne.s32.totalorder %s1773_s28, 0 }
  0x3e   : > { %v1261_v11 = vld [vmem:[%s1547_s26 + $0x4] ss:$8 sps:$4 sm:$0xff]   ;;  %v1255_v13 = vld [vmem:[%s1766_s1 + $0x70] sm:$0xff]   ;;  %v1257_v16 = vld [vmem:[%s1766_s1 + $0x78] sm:$0xff]   ;;  %245 = vst.msk [vmem:[#allocation2 + $0x18] sm:$0xff] %vm241_vm0, %v1400_v32  ;;  %p1314_p8 = scmp.ne.s32.totalorder %s1714_s11, %s1313_s12  ;;  %s1401_s13 = smov [#allocation6]  }
  0x3f   : > { %v1254_v12 = vld [vmem:[%s1766_s1 + $0x28] sm:$0xff]   ;;  %535 = vmatprep.mubr.bf16.mxu0 %v1261_v11  ;;  %v1256_v14 = vld [vmem:[%s1766_s1 + $0x30] sm:$0xff]   ;;  %v1258_v17 = vld [vmem:[%s1766_s1 + $0x38] sm:$0xff]   ;;  %246 = vst.msk [vmem:[#allocation2 + $0x20] sm:$0xff] %vm241_vm0, %v1400_v32  ;;  %s1317_s14 = sshll.u32 %s1401_s13, 4  ;;  %s1318_s14 = int_to_ptr.vmem [resolvable:$false] %s1317_s14 }
  0x40   : > { %1056 = vmatpush3.bf16.msra.mxu0 %v1246_v3  ;;  %1169 = vmatpush3.bf16.msra.mxu1 %v1246_v3  ;;  %v1276_v15 = vld [vmem:[%s1547_s26 + $0x64] ss:$8 sps:$4 sm:$0xff]   ;;  %v1259_v18 = vld [vmem:[%s1547_s26] ss:$8 sps:$4 sm:$0xff]   ;;  %v1262_v19 = vld [vmem:[%s1547_s26 + $0x14] ss:$8 sps:$4 sm:$0xff]   ;;  %p1315_p11 = pnand %p1314_p8, %p1777_p9  ;;  %p1320_p6 = scmp.lt.s32.totalorder %s1714_s11, %s1318_s14 }
  0x41   : > { %1057 = vmatprep.subr.bf16.mxu0 %v1247_v4  ;;  %1162 = vmatprep.subr.bf16.mxu1 %v1247_v4  ;;  %v1274_v20 = vld [vmem:[%s1547_s26 + $0x60] ss:$8 sps:$4 sm:$0xff]   ;;  %v1280_v21 = vld [vmem:[%s1547_s26 + $0x74] ss:$8 sps:$4 sm:$0xff]   ;;  %v1264_v22 = vld [vmem:[%s1547_s26 + $0x10] ss:$8 sps:$4 sm:$0xff]  }
  0x42   : > { %583 = vmatprep.mubr.bf16.mxu1 %v1276_v15  ;;  %v1265_v23 = vld [vmem:[%s1547_s26 + $0x24] ss:$8 sps:$4 sm:$0xff]   ;;  %v1282_v24 = vld [vmem:[%s1547_s26 + $0x70] ss:$8 sps:$4 sm:$0xff]   ;;  %v1267_v25 = vld [vmem:[%s1547_s26 + $0x20] ss:$8 sps:$4 sm:$0xff]   ;;  %p1316_p0 = pneg %p1315_p11 }
  0x43   : > { %v1268_v26 = vld [vmem:[%s1547_s26 + $0x34] ss:$8 sps:$4 sm:$0xff]   ;;  %v1270_v27 = vld [vmem:[%s1547_s26 + $0x30] ss:$8 sps:$4 sm:$0xff]   ;;  %v1271_v28 = vld [vmem:[%s1547_s26 + $0x44] ss:$8 sps:$4 sm:$0xff]  }
  0x44   : > { %1058 = vmatpush3.bf16.msra.mxu0 %v1248_v5  ;;  %1170 = vmatpush3.bf16.msra.mxu1 %v1248_v5  ;;  %v1273_v29 = vld [vmem:[%s1547_s26 + $0x40] ss:$8 sps:$4 sm:$0xff]   ;;  %v1277_v30 = vld [vmem:[%s1547_s26 + $0x54] ss:$8 sps:$4 sm:$0xff]   ;;  %v1279_v31 = vld [vmem:[%s1547_s26 + $0x50] ss:$8 sps:$4 sm:$0xff]  }
  0x45   : > { %1059 = vmatprep.subr.bf16.mxu0 %v1249_v6  ;;  %1163 = vmatprep.subr.bf16.mxu1 %v1249_v6  ;;  %247 = vst.msk [vmem:[#allocation2 + $0x28] sm:$0xff] %vm241_vm0, %v1400_v32  ;;  %248 = vst.msk [vmem:[#allocation2 + $0x30] sm:$0xff] %vm241_vm0, %v1400_v32  ;;  %v652_v33 = vld [vmem:[%s1767_s2] sm:$0xff]  ;;  %v296_v42 = vld [vmem:[#allocation2 + $0x8] sm:$0xff]  ;;  %s1319_s6 = scalar_lea.vmem %s1318_s14, 4096 }
  0x46   : > { %249 = vst.msk [vmem:[#allocation2 + $0x38] sm:$0xff] %vm241_vm0, %v1400_v32  ;;  %250 = vst.msk [vmem:[#allocation2 + $0x40] sm:$0xff] %vm241_vm0, %v1400_v32  ;;  %v295_v35 = vld [vmem:[#allocation2] sm:$0xff]  ;;  %v297_v55 = vld [vmem:[#allocation2 + $0x10] sm:$0xff]  ;;  %p1321_p13 = scmp.lt.s32.totalorder %s1319_s6, %s1313_s12 }
  0x47   : > { %251 = vst.msk [vmem:[#allocation2 + $0x48] sm:$0xff] %vm241_vm0, %v1400_v32  ;;  %252 = vst.msk [vmem:[#allocation2 + $0x50] sm:$0xff] %vm241_vm0, %v1400_v32  ;;  %v298_v62 = vld [vmem:[#allocation2 + $0x18] sm:$0xff] }
  0x48   : > { %1060 = vmatpush3.bf16.msra.mxu0 %v1250_v7  ;;  %1171 = vmatpush3.bf16.msra.mxu1 %v1250_v7  ;;  %253 = vst.msk [vmem:[#allocation2 + $0x58] sm:$0xff] %vm241_vm0, %v1400_v32  ;;  %254 = vst.msk [vmem:[#allocation2 + $0x60] sm:$0xff] %vm241_vm0, %v1400_v32  ;;  %p1322_p2 = por %p1321_p13, %p1320_p6 }
  0x49   : > { %1061 = vmatprep.subr.bf16.mxu0 %v1251_v8  ;;  %1164 = vmatprep.subr.bf16.mxu1 %v1251_v8  ;;  %255 = vst.msk [vmem:[#allocation2 + $0x68] sm:$0xff] %vm241_vm0, %v1400_v32  ;;  %256 = vst.msk [vmem:[#allocation2 + $0x70] sm:$0xff] %vm241_vm0, %v1400_v32 }
  0x4a   : > { %257 = vst.msk [vmem:[#allocation2 + $0x78] sm:$0xff] %vm241_vm0, %v1400_v32  ;;  %p1323_p5 = pnand %p1322_p2, %p1316_p0 }
  0x4c   : > { %1062 = vmatpush3.bf16.msra.mxu0 %v1252_v9  ;;  %1172 = vmatpush3.bf16.msra.mxu1 %v1252_v9 }
  0x4d   : > { %1063 = vmatprep.subr.bf16.mxu0 %v1253_v10  ;;  %1165 = vmatprep.subr.bf16.mxu1 %v1253_v10 }
  0x4f   : > { %v307_v40 = vld [vmem:[#allocation2 + $0x60] sm:$0xff] }
  0x50   : > { %1064 = vmatpush3.bf16.msra.mxu0 %v1254_v12  ;;  %1173 = vmatpush3.bf16.msra.mxu1 %v1254_v12  ;;  %v308_v48 = vld [vmem:[#allocation2 + $0x68] sm:$0xff]  ;;  %v309_v60 = vld [vmem:[#allocation2 + $0x70] sm:$0xff] }
  0x51   : > { %1065 = vmatprep.subr.bf16.mxu0 %v1255_v13  ;;  %1166 = vmatprep.subr.bf16.mxu1 %v1255_v13  ;;  %v310_v4 = vld [vmem:[#allocation2 + $0x78] sm:$0xff]  ;;  %v299_v13 = vld [vmem:[#allocation2 + $0x20] sm:$0xff] }
  0x54   : > { %1066 = vmatpush3.bf16.msra.mxu0 %v1256_v14  ;;  %1174 = vmatpush3.bf16.msra.mxu1 %v1256_v14 }
  0x55   : > { %1067 = vmatprep.subr.bf16.mxu0 %v1257_v16  ;;  %1167 = vmatprep.subr.bf16.mxu1 %v1257_v16 }
  0x58   : > { %1068 = vmatpush3.bf16.msra.mxu0 %v1258_v17  ;;  %1175 = vmatpush3.bf16.msra.mxu1 %v1258_v17  ;;  %v300_v17 = vld [vmem:[#allocation2 + $0x28] sm:$0xff] }
  0x59   : > { %1134 = vmatprep.subr.mxu1 %v652_v33 }
  0x5b   : > { %536 = vmatmul.mubr.bf16.vlgmr.msra.gmra.mrb[0].mxu0 %v1259_v18  ;;  %584 = vmatmul.mubr.bf16.vlgmr.msra.gmra.mrb[0].mxu1 %v1274_v20 }
  0x5c   : > { %543 = vmatprep.mubr.bf16.mxu0 %v1262_v19  ;;  %591 = vmatprep.mubr.bf16.mxu1 %v1280_v21 }
  0x5d   : > { %1135 = vmatpush3.msra.mxu1 %v652_v33 }
  0x63   : > { %544 = vmatmul.mubr.bf16.gmra.mrb[4].mxu0 %v1264_v22  ;;  %592 = vmatmul.mubr.bf16.gmra.mrb[4].mxu1 %v1282_v24 }
  0x64   : > { %551 = vmatprep.mubr.bf16.mxu0 %v1265_v23 }
  0x6b   : > { %552 = vmatmul.mubr.bf16.gmra.mrb[8].mxu0 %v1267_v25  ;;  %v301_v25 = vld [vmem:[#allocation2 + $0x30] sm:$0xff] }
  0x6c   : > { %559 = vmatprep.mubr.bf16.mxu0 %v1268_v26 }
  0x73   : > { %560 = vmatmul.mubr.bf16.gmra.mrb[12].mxu0 %v1270_v27 }
  0x74   : > { %567 = vmatprep.mubr.bf16.mxu0 %v1271_v28 }
  0x7b   : > { %568 = vmatmul.mubr.bf16.gmra.mrb[16].mxu0 %v1273_v29  ;;  %v302_v29 = vld [vmem:[#allocation2 + $0x38] sm:$0xff] }
  0x7c   : > { %575 = vmatprep.mubr.bf16.mxu0 %v1277_v30 }
  0x83   : > { %576 = vmatmul.mubr.bf16.gmra.mrb[20].mxu0 %v1279_v31 }
 0x12e   : > { %v1069_v34 = vpop.f32.mrb[0].mxu0  ;;  %v1105_v37 = vpop.f32.mrb[0].mxu1 }
 0x12f   : > { %v1070_v36 = vpop.f32.mrb[1].mxu0  ;;  %v1106_v41 = vpop.f32.mrb[1].mxu1 }
 0x130   : > { %v1071_v38 = vadd.f32 %v1070_v36, %v1069_v34  ;;  %v1072_v39 = vpop.f32.mrb[2].mxu0  ;;  %v1107_v44 = vadd.f32 %v1106_v41, %v1105_v37  ;;  %v1108_v45 = vpop.f32.mrb[2].mxu1  ;;  %v303_v37 = vld [vmem:[#allocation2 + $0x40] sm:$0xff]  ;;  %v304_v41 = vld [vmem:[#allocation2 + $0x48] sm:$0xff] }
 0x131   : > { %v1073_v43 = vpop.f32.mrb[3].mxu0  ;;  %v1109_v49 = vpop.f32.mrb[3].mxu1 }
 0x132   : > { %v600_v46 = vadd.f32 %v1071_v38, %v295_v35  ;;  %v1074_v47 = vadd.f32 %v1073_v43, %v1072_v39  ;;  %v612_v50 = vadd.f32 %v1107_v44, %v307_v40  ;;  %v1110_v51 = vadd.f32 %v1109_v49, %v1108_v45  ;;  %v305_v49 = vld [vmem:[#allocation2 + $0x50] sm:$0xff] }
 0x134   : > { %617 = vst.msk [vmem:[#allocation2] sm:$0xff] %vm241_vm0, %v600_v46  ;;  %v601_v52 = vadd.f32 %v1074_v47, %v296_v42  ;;  %629 = vst.msk [vmem:[#allocation2 + $0x60] sm:$0xff] %vm241_vm0, %v612_v50  ;;  %v613_v53 = vadd.f32 %v1110_v51, %v308_v48 }
 0x136   : > { %618 = vst.msk [vmem:[#allocation2 + $0x8] sm:$0xff] %vm241_vm0, %v601_v52  ;;  %v1075_v54 = vpop.f32.mrb[4].mxu0  ;;  %630 = vst.msk [vmem:[#allocation2 + $0x68] sm:$0xff] %vm241_vm0, %v613_v53  ;;  %v1111_v57 = vpop.f32.mrb[4].mxu1  ;;  %v306_v53 = vld [vmem:[#allocation2 + $0x58] sm:$0xff] }
 0x137   : > { %v1076_v56 = vpop.f32.mrb[5].mxu0  ;;  %v1112_v61 = vpop.f32.mrb[5].mxu1 }
 0x138   : > { %v1077_v58 = vadd.f32 %v1076_v56, %v1075_v54  ;;  %v1078_v59 = vpop.f32.mrb[6].mxu0  ;;  %v1113_v0 = vadd.f32 %v1112_v61, %v1111_v57  ;;  %v1114_v1 = vpop.f32.mrb[6].mxu1 }
 0x139   : > { %v1079_v63 = vpop.f32.mrb[7].mxu0  ;;  %v1115_v5 = vpop.f32.mrb[7].mxu1 }
 0x13a   : > { %v602_v2 = vadd.f32 %v1077_v58, %v297_v55  ;;  %v1080_v3 = vadd.f32 %v1079_v63, %v1078_v59  ;;  %v614_v7 = vadd.f32 %v1113_v0, %v309_v60  ;;  %v1116_v8 = vadd.f32 %v1115_v5, %v1114_v1 }
 0x13b   : > { %v636_v6 = vld [vmem:[#allocation2] sm:$0xff] }
 0x13c   : > { %619 = vst.msk [vmem:[#allocation2 + $0x10] sm:$0xff] %vm241_vm0, %v602_v2  ;;  %v603_v9 = vadd.f32 %v1080_v3, %v298_v62  ;;  %1136 = vmatprep.mubr.msk.f32.mxu1 %vm241_vm0, %v636_v6  ;;  %631 = vst.msk [vmem:[#allocation2 + $0x70] sm:$0xff] %vm241_vm0, %v614_v7  ;;  %v615_v11 = vadd.f32 %v1116_v8, %v310_v4  ;;  %v648_v62 = vld [vmem:[#allocation2 + $0x60] sm:$0xff] }
 0x13d   : > { %v637_v10 = vld [vmem:[#allocation2 + $0x8] sm:$0xff]  ;;  %v1671_v2 = vld [vmem:[%s1768_s3] ss:$0 sm:$0xff] }
 0x13e   : > { %620 = vst.msk [vmem:[#allocation2 + $0x18] sm:$0xff] %vm241_vm0, %v603_v9  ;;  %v1081_v12 = vpop.f32.mrb[8].mxu0  ;;  %1137 = vmatmul.mubr.msk.f32.vlgmr.msra.gmra.mrb[8].mxu1 %vm241_vm0, %v637_v10  ;;  %632 = vst.msk [vmem:[#allocation2 + $0x78] sm:$0xff] %vm241_vm0, %v615_v11  ;;  %v649_v0 = vld [vmem:[#allocation2 + $0x68] sm:$0xff] }
 0x13f   : > { %v1082_v14 = vpop.f32.mrb[9].mxu0 }
 0x140   : > { %v1083_v15 = vadd.f32 %v1082_v14, %v1081_v12  ;;  %v1084_v16 = vpop.f32.mrb[10].mxu0 }
 0x141   : > { %v1085_v18 = vpop.f32.mrb[11].mxu0 }
 0x142   : > { %v604_v19 = vadd.f32 %v1083_v15, %v299_v13  ;;  %v1086_v20 = vadd.f32 %v1085_v18, %v1084_v16 }
 0x143   : > { %v638_v21 = vld [vmem:[#allocation2 + $0x10] sm:$0xff] }
 0x144   : > { %621 = vst.msk [vmem:[#allocation2 + $0x20] sm:$0xff] %vm241_vm0, %v604_v19  ;;  %v605_v22 = vadd.f32 %v1086_v20, %v300_v17  ;;  %1139 = vmatprep.mubr.msk.f32.mxu1 %vm241_vm0, %v638_v21  ;;  %v650_v63 = vld [vmem:[#allocation2 + $0x70] sm:$0xff] }
 0x145   : > { %v639_v23 = vld [vmem:[#allocation2 + $0x18] sm:$0xff] }
 0x146   : > { %622 = vst.msk [vmem:[#allocation2 + $0x28] sm:$0xff] %vm241_vm0, %v605_v22  ;;  %v1087_v24 = vpop.f32.mrb[12].mxu0  ;;  %1140 = vmatmul.mubr.msk.f32.gmra.mrb[10].mxu1 %vm241_vm0, %v639_v23  ;;  %v651_v1 = vld [vmem:[#allocation2 + $0x78] sm:$0xff] }
 0x147   : > { %v1088_v26 = vpop.f32.mrb[13].mxu0 }
 0x148   : > { %v1089_v27 = vadd.f32 %v1088_v26, %v1087_v24  ;;  %v1090_v28 = vpop.f32.mrb[14].mxu0 }
 0x149   : > { %v1091_v30 = vpop.f32.mrb[15].mxu0 }
 0x14a   : > { %v606_v31 = vadd.f32 %v1089_v27, %v301_v25  ;;  %v1092_v32 = vadd.f32 %v1091_v30, %v1090_v28 }
 0x14b   : > { %v640_v33 = vld [vmem:[#allocation2 + $0x20] sm:$0xff] }
 0x14c   : > { %623 = vst.msk [vmem:[#allocation2 + $0x30] sm:$0xff] %vm241_vm0, %v606_v31  ;;  %v607_v34 = vadd.f32 %v1092_v32, %v302_v29  ;;  %1142 = vmatprep.mubr.msk.f32.mxu1 %vm241_vm0, %v640_v33 }
 0x14d   : > { %v641_v35 = vld [vmem:[#allocation2 + $0x28] sm:$0xff] }
 0x14e   : > { %624 = vst.msk [vmem:[#allocation2 + $0x38] sm:$0xff] %vm241_vm0, %v607_v34  ;;  %v1093_v36 = vpop.f32.mrb[16].mxu0  ;;  %1143 = vmatmul.mubr.msk.f32.gmra.mrb[12].mxu1 %vm241_vm0, %v641_v35 }
 0x14f   : > { %v1094_v38 = vpop.f32.mrb[17].mxu0 }
 0x150   : > { %v1095_v39 = vadd.f32 %v1094_v38, %v1093_v36  ;;  %v1096_v40 = vpop.f32.mrb[18].mxu0 }
 0x151   : > { %v1097_v42 = vpop.f32.mrb[19].mxu0 }
 0x152   : > { %v608_v43 = vadd.f32 %v1095_v39, %v303_v37  ;;  %v1098_v44 = vadd.f32 %v1097_v42, %v1096_v40 }
 0x153   : > { %v642_v45 = vld [vmem:[#allocation2 + $0x30] sm:$0xff] }
 0x154   : > { %625 = vst.msk [vmem:[#allocation2 + $0x40] sm:$0xff] %vm241_vm0, %v608_v43  ;;  %v609_v46 = vadd.f32 %v1098_v44, %v304_v41  ;;  %1145 = vmatprep.mubr.msk.f32.mxu1 %vm241_vm0, %v642_v45 }
 0x155   : > { %v643_v47 = vld [vmem:[#allocation2 + $0x38] sm:$0xff] }
 0x156   : > { %626 = vst.msk [vmem:[#allocation2 + $0x48] sm:$0xff] %vm241_vm0, %v609_v46  ;;  %v1099_v48 = vpop.f32.mrb[20].mxu0  ;;  %1146 = vmatmul.mubr.msk.f32.gmra.mrb[14].mxu1 %vm241_vm0, %v643_v47 }
 0x157   : > { %v1100_v50 = vpop.f32.mrb[21].mxu0 }
 0x158   : > { %v1101_v51 = vadd.f32 %v1100_v50, %v1099_v48  ;;  %v1102_v52 = vpop.f32.mrb[22].mxu0 }
 0x159   : > { %v1103_v54 = vpop.f32.mrb[23].mxu0 }
 0x15a   : > { %v610_v55 = vadd.f32 %v1101_v51, %v305_v49  ;;  %v1104_v56 = vadd.f32 %v1103_v54, %v1102_v52 }
 0x15b   : > { %v644_v57 = vld [vmem:[#allocation2 + $0x40] sm:$0xff] }
 0x15c   : > { %627 = vst.msk [vmem:[#allocation2 + $0x50] sm:$0xff] %vm241_vm0, %v610_v55  ;;  %v611_v58 = vadd.f32 %v1104_v56, %v306_v53  ;;  %1148 = vmatprep.mubr.msk.f32.mxu1 %vm241_vm0, %v644_v57 }
 0x15d   : > { %v645_v59 = vld [vmem:[#allocation2 + $0x48] sm:$0xff] }
 0x15e   : > { %628 = vst.msk [vmem:[#allocation2 + $0x58] sm:$0xff] %vm241_vm0, %v611_v58  ;;  %1149 = vmatmul.mubr.msk.f32.gmra.mrb[16].mxu1 %vm241_vm0, %v645_v59 }
 0x163   : > { %v646_v60 = vld [vmem:[#allocation2 + $0x50] sm:$0xff] }
 0x164   : > { %1151 = vmatprep.mubr.msk.f32.mxu1 %vm241_vm0, %v646_v60 }
 0x165   : > { %v647_v61 = vld [vmem:[#allocation2 + $0x58] sm:$0xff] }
 0x166   : > { %1152 = vmatmul.mubr.msk.f32.gmra.mrb[18].mxu1 %vm241_vm0, %v647_v61 }
 0x167   : > { %1154 = vmatprep.mubr.msk.f32.mxu1 %vm241_vm0, %v648_v62 }
 0x16a   : > { %1155 = vmatmul.mubr.msk.f32.gmra.mrb[20].mxu1 %vm241_vm0, %v649_v0 }
 0x16b   : > { %1157 = vmatprep.mubr.msk.f32.mxu1 %vm241_vm0, %v650_v63 }
 0x16e   : > { %1158 = vmatmul.mubr.msk.f32.gmra.mrb[22].mxu1 %vm241_vm0, %v651_v1 }
 0x211   : > { %v1138_v3 = vpop.f32.mrb[8].mxu1 }
 0x212   : > { %v780_v4 = vadd.f32 %v1138_v3, %v1671_v2  ;;  %v774_v5 = vpop.f32.mrb[9].mxu1 }
 0x213   : > { %v775_v6 = vadd.f32 %v1671_v2, %v774_v5 }
 0x214   : > { %v854_v7 = vmax.f32 %v780_v4, 0.0 }
 0x215   : > { %v853_v8 = vmax.f32 %v775_v6, 0.0 }
 0x216   : > { %870 = vst [vmem:[%s1677_s9 + $0x8] sm:$0xff] %v854_v7 }
 0x217   : > { %869 = vst [vmem:[%s1677_s9] sm:$0xff] %v853_v8 }
 0x219   : > { %v1141_v9 = vpop.f32.mrb[10].mxu1 }
 0x21a   : > { %v790_v10 = vadd.f32 %v1141_v9, %v1671_v2  ;;  %v784_v11 = vpop.f32.mrb[11].mxu1 }
 0x21b   : > { %v785_v12 = vadd.f32 %v1671_v2, %v784_v11 }
 0x21c   : > { %v856_v13 = vmax.f32 %v790_v10, 0.0 }
 0x21d   : > { %v855_v14 = vmax.f32 %v785_v12, 0.0 }
 0x21e   : > { %872 = vst [vmem:[%s1677_s9 + $0x18] sm:$0xff] %v856_v13 }
 0x21f   : > { %871 = vst [vmem:[%s1677_s9 + $0x10] sm:$0xff] %v855_v14 }
 0x221   : > { %v1144_v15 = vpop.f32.mrb[12].mxu1 }
 0x222   : > { %v800_v16 = vadd.f32 %v1144_v15, %v1671_v2  ;;  %v794_v17 = vpop.f32.mrb[13].mxu1 }
 0x223   : > { %v795_v18 = vadd.f32 %v1671_v2, %v794_v17 }
 0x224   : > { %v858_v19 = vmax.f32 %v800_v16, 0.0 }
 0x225   : > { %v857_v20 = vmax.f32 %v795_v18, 0.0 }
 0x226   : > { %874 = vst [vmem:[%s1677_s9 + $0x28] sm:$0xff] %v858_v19 }
 0x227   : > { %873 = vst [vmem:[%s1677_s9 + $0x20] sm:$0xff] %v857_v20 }
 0x229   : > { %v1147_v21 = vpop.f32.mrb[14].mxu1 }
 0x22a   : > { %v810_v22 = vadd.f32 %v1147_v21, %v1671_v2  ;;  %v804_v23 = vpop.f32.mrb[15].mxu1 }
 0x22b   : > { %v805_v24 = vadd.f32 %v1671_v2, %v804_v23 }
 0x22c   : > { %v860_v25 = vmax.f32 %v810_v22, 0.0 }
 0x22d   : > { %v859_v26 = vmax.f32 %v805_v24, 0.0 }
 0x22e   : > { %876 = vst [vmem:[%s1677_s9 + $0x38] sm:$0xff] %v860_v25 }
 0x22f   : > { %875 = vst [vmem:[%s1677_s9 + $0x30] sm:$0xff] %v859_v26 }
 0x231   : > { %v1150_v27 = vpop.f32.mrb[16].mxu1 }
 0x232   : > { %v820_v28 = vadd.f32 %v1150_v27, %v1671_v2  ;;  %v814_v29 = vpop.f32.mrb[17].mxu1 }
 0x233   : > { %v815_v30 = vadd.f32 %v1671_v2, %v814_v29 }
 0x234   : > { %v862_v31 = vmax.f32 %v820_v28, 0.0 }
 0x235   : > { %v861_v32 = vmax.f32 %v815_v30, 0.0 }
 0x236   : > { %878 = vst [vmem:[%s1677_s9 + $0x48] sm:$0xff] %v862_v31 }
 0x237   : > { %877 = vst [vmem:[%s1677_s9 + $0x40] sm:$0xff] %v861_v32 }
 0x239   : > { %v1153_v33 = vpop.f32.mrb[18].mxu1 }
 0x23a   : > { %v830_v34 = vadd.f32 %v1153_v33, %v1671_v2  ;;  %v824_v35 = vpop.f32.mrb[19].mxu1 }
 0x23b   : > { %v825_v36 = vadd.f32 %v1671_v2, %v824_v35 }
 0x23c   : > { %v864_v37 = vmax.f32 %v830_v34, 0.0 }
 0x23d   : > { %v863_v38 = vmax.f32 %v825_v36, 0.0  ;;  %v1156_v39 = vpop.f32.mrb[20].mxu1 }
 0x23e   : > { %880 = vst [vmem:[%s1677_s9 + $0x58] sm:$0xff] %v864_v37  ;;  %v840_v40 = vadd.f32 %v1156_v39, %v1671_v2  ;;  %v834_v41 = vpop.f32.mrb[21].mxu1 }
 0x23f   : > { %879 = vst [vmem:[%s1677_s9 + $0x50] sm:$0xff] %v863_v38  ;;  %v835_v42 = vadd.f32 %v1671_v2, %v834_v41 }
 0x240   : > { %v866_v43 = vmax.f32 %v840_v40, 0.0 }
 0x241   : > { %v865_v44 = vmax.f32 %v835_v42, 0.0  ;;  %v1159_v45 = vpop.f32.mrb[22].mxu1 }
 0x242   : > { %882 = vst [vmem:[%s1677_s9 + $0x68] sm:$0xff] %v866_v43  ;;  %v850_v46 = vadd.f32 %v1159_v45, %v1671_v2  ;;  %v844_v47 = vpop.f32.mrb[23].mxu1 }
 0x243   : > { %881 = vst [vmem:[%s1677_s9 + $0x60] sm:$0xff] %v865_v44  ;;  %v845_v48 = vadd.f32 %v1671_v2, %v844_v47 }
 0x244   : > { %v868_v49 = vmax.f32 %v850_v46, 0.0 }
 0x245   : > { %v867_v50 = vmax.f32 %v845_v48, 0.0 }
 0x246   : > { %884 = vst [vmem:[%s1677_s9 + $0x78] sm:$0xff] %v868_v49 }
 0x247   : > { %883 = vst [vmem:[%s1677_s9 + $0x70] sm:$0xff] %v867_v50 }
 0x248   : > { %1326 = shalt.err (!%p1323_p5)
}
 0x249   : > { %s1327_s5 = scalar_lea.hbm %s1712_s10, 2048  ;;  %s1331_s8 = scalar_lea.hbm %s1769_s4, 4096 }
 0x24a   : > { %p1328_p4 = scmp.ne.s32.totalorder %s1712_s10, %s1327_s5  ;;  %p1332_p12 = scmp.lt.u32.totalorder %s1712_s10, %s1769_s4 }
 0x24b   : > { %p1333_p1 = scmp.lt.u32.totalorder %s1331_s8, %s1327_s5  ;;  %p1335_p8 = scmp.lt.u32.totalorder %s1327_s5, %s1712_s10 }
 0x24c   : > { %p1329_p7 = pnand %p1328_p4, %p1777_p9 }
 0x24d   : > { %p1334_p3 = por %p1333_p1, %p1332_p12 }
 0x24e   : > { %p1330_p10 = pneg %p1329_p7 }
 0x24f   : > { %p1336_p11 = por %p1335_p8, %p1334_p3 }
 0x251   : > { %p1337_p0 = pnand %p1336_p11, %p1330_p10 }
 0x253   : > { %1340 = shalt.err (!%p1337_p0)
}
 0x254   : > { %s1402_s24 = smov 128   ;;  %s1403_s21 = smov 8  }
 0x255   : > { %1178 = dma.vmem_to_hbm [thread:$0]  (%p1777_p9), %s1714_s11, 2048, %s1712_s10, %s886_s18, %s1402_s24, %s1402_s24, %s1403_s21  }
 0x256 PF: > { %s914_s25 = sand.u32 1, %s1375_s15   ;;  %p1778_p6 = scmp.ne.s32.totalorder %s1774_s30, 0 }
 0x257   : > { %p1779_p13 = scmp.ge.s32.totalorder %s1395_s20, 2  ;;  %s915_s12 = scalar_lea.sflag [#allocation5], %s914_s25 }
 0x259   : > { %p1185_p2 = pnand %p1779_p13, %p1778_p6 }
 0x25b   : > { %1370 = dma.done.wait (!%p1185_p2), %s915_s12, 2048  }
 0x25c   : > { %1372 = vsyncadd (!%p1185_p2), %s915_s12, 4294965248  ;;  %s20_s20 = sadd.s32 1, %s1395_s20   ;;  %s1780_s15 = smov %s1379_s16 }
 0x25d   : > { %p17_p5 = scmp.ge.s32.totalorder %s20_s20, 4   ;;  %s1781_s16 = smov %s1383_s17 }
 0x25e   : > { %s1782_s17 = smov %s1485_s29  ;;  %s1783_s18 = smov %s1391_s19 }
 0x25f   : > { %s1784_s19 = smov %s1786_s23  ;;  %19 = sbr.rel (!%p17_p5) target bundleno = 6 (0x6), region = 90 }
 0x266   :  { %920 = vsyncpa [#allocation4], 1 }
 0x267   :  { %922 = vsyncpa [#allocation4 + $0x1], 1 }
 0x268   :  { %923 = vsyncpa [#allocation5], 1 }
 0x269   :  { %925 = vsyncpa [#allocation5 + $0x1], 1 }

</bundles_post_ra>
